<compile_context>
chip_gen: v7x
topology: tpu7x:2x2x1
jax: 0.10.0
libtpu: 0.0.40
codegen_flags: <defaults>
</compile_context>

<pallas_src>
import functools

import jax
import jax.numpy as jnp
from jax.experimental import pallas as pl
from jax.experimental.pallas import tpu as pltpu

ALPHA = 0.1   # Lyapunov decrease rate
EPS   = 1e-6  # projection denominator guard

# Force >=2 grid steps (v7x megacore split) once the batch has at least this
# many rows; below that the kernel is a single tiny tile anyway.
_MIN_ROWS_FOR_CORE_SPLIT = 512


def _round_up(n, m):
    return ((n + m - 1) // m) * m


def _pad2(a, rows, cols):
    return jnp.pad(a, ((0, rows - a.shape[0]), (0, cols - a.shape[1])))


def stable_policy_kernel(x_ref, w1p_ref, b1_ref, w2_ref, b2_ref, out_ref, *, hp, d):
    x = x_ref[...]                                                      # (TB, D) lane-narrow

    # ---- fused x-side matmuls:  x @ [W1 | P]  ->  [h_pre | px] -------------
    # Output width hp + Dp is a multiple of 128, so both slices below are
    # lane-tile aligned.  Contraction dim is the natural D (MXU pads K).
    xw = jnp.dot(x, w1p_ref[...], preferred_element_type=jnp.float32)   # (TB, Hp+Dp)
    h_pre = xw[:, :hp]                                                  # (TB, Hp)
    px    = xw[:, hp:]                                                  # (TB, Dp) = x P  (lanes >= d are 0)

    # ---- pi(x): 2-layer tanh MLP --------------------------------------------
    h = jnp.tanh(h_pre + b1_ref[...])                                   # (TB, Hp)
    u = jnp.dot(h, w2_ref[...], preferred_element_type=jnp.float32) + b2_ref[...]
                                                                        # (TB, Dp) (lanes >= d are 0)

    # ---- stable_projection.project_action(u, x),  g = 2 P x = 2 px ----------
    v  = jnp.sum(x * px[:, :d], axis=-1, keepdims=True)                 # V(x) = x^T P x
    gu = 2.0 * jnp.sum(px * u, axis=-1, keepdims=True)                  # g . u
    gg = 4.0 * jnp.sum(px * px, axis=-1, keepdims=True)                 # ||g||^2
    viol = jnp.maximum(gu + ALPHA * v, 0.0)                             # relu violation
    # Exact divide (the correction scales an O(|u|) term; approx vrcp would
    # risk exceeding the 1e-4 f32 tolerance).
    res = u - (2.0 * viol / (gg + EPS)) * px                            # (TB, Dp)

    # Lane-narrow store: prefix slice (offset 0) of the padded result.
    out_ref[...] = res[:, :d]                                           # (TB, D)


def stable_policy(x, w1, b1, w2, b2, p, *, block_b=4096):
    """block_b: batch-tile upper bound.  4096 suits v6e/v7x; sweep up to 8192
    on v7x (3.2 TB/s HBM) or down to ~2048 on v5e."""
    B, D = x.shape
    H = w1.shape[1]

    # Weight feature axes live on lanes -> pad to multiples of 128.  x/out are
    # NOT lane-padded: their last BlockSpec dim equals the full array dim (D).
    Dp = _round_up(D, 128)
    Hp = _round_up(H, 128)

    # --- batch tiling -------------------------------------------------------
    B8 = _round_up(B, 8)                       # sublane alignment
    TB = min(block_b, B8)
    nt = pl.cdiv(B8, TB)
    # Keep >= 2 grid steps for large batches so the "parallel" batch axis can
    # split across both v7x TensorCores (no effect on correctness elsewhere).
    if nt == 1 and B8 >= _MIN_ROWS_FOR_CORE_SPLIT:
        nt = 2
    # Balance the tiles: same number of grid steps, tail over-padding < 8 rows
    # per tile (instead of up to TB-1 rows with round_up(B, TB)).
    TB = _round_up(pl.cdiv(B8, nt), 8)
    Bp = nt * TB

    # Zero row-padding only (padded rows give px = 0 -> viol = 0, finite output,
    # and are sliced off below).
    xp = jnp.pad(x, ((0, Bp - B), (0, 0)))                              # (Bp, D)

    # VMEM-resident weights: fused [W1 | P] with 128-aligned output width.
    w1p = jnp.concatenate([_pad2(w1, D, Hp), _pad2(p, D, Dp)], axis=1)  # (D, Hp+Dp)
    b1p = _pad2(b1, 1, Hp)                                              # (1, Hp)
    w2p = _pad2(w2, Hp, Dp)                                             # (Hp, Dp)
    b2p = _pad2(b2, 1, Dp)                                              # (1, Dp)

    grid = (nt,)

    flops = 2 * Bp * (D * (Hp + Dp) + Hp * Dp) + 12 * Bp * Dp
    bytes_accessed = 4 * (2 * Bp * D + w1p.size + b1p.size + w2p.size + b2p.size)

    out_padded = pl.pallas_call(
        functools.partial(stable_policy_kernel, hp=Hp, d=D),
        out_shape=jax.ShapeDtypeStruct((Bp, D), jnp.float32),
        grid=grid,
        in_specs=[
            pl.BlockSpec((TB, D), lambda i: (i, 0)),         # x       (streamed, lane-narrow)
            pl.BlockSpec((D, Hp + Dp), lambda i: (0, 0)),    # [W1|P]  (VMEM resident)
            pl.BlockSpec((1, Hp), lambda i: (0, 0)),         # b1      (VMEM resident)
            pl.BlockSpec((Hp, Dp), lambda i: (0, 0)),        # W2      (VMEM resident)
            pl.BlockSpec((1, Dp), lambda i: (0, 0)),         # b2      (VMEM resident)
        ],
        out_specs=pl.BlockSpec((TB, D), lambda i: (i, 0)),   # out     (streamed, lane-narrow)
        compiler_params=pltpu.CompilerParams(
            dimension_semantics=("parallel",),               # megacore split on v7x
        ),
        cost_estimate=pl.CostEstimate(
            flops=flops,
            transcendentals=Bp * Hp,                         # tanh
            bytes_accessed=bytes_accessed,
        ),
    )(xp, w1p, b1p, w2p, b2p)

    return out_padded[:B]


def reference(x, w1, b1, w2, b2, p):
    h = jnp.tanh(x @ w1 + b1)
    u = h @ w2 + b2
    px = x @ p
    g = 2.0 * px
    v = jnp.sum(x * px, axis=-1, keepdims=True)
    gu = jnp.sum(g * u, axis=-1, keepdims=True)
    gg = jnp.sum(g * g, axis=-1, keepdims=True)
    viol = jnp.maximum(gu + ALPHA * v, 0.0)
    return u - (viol / (gg + EPS)) * g


if __name__ == "__main__":
    D, H = 16, 32  # state/action dim, hidden dim

    key = jax.random.PRNGKey(0)
    k_x, k_w1, k_b1, k_w2, k_b2, k_p, k_x2, k_x3 = jax.random.split(key, 8)

    # Deterministic parameter init (synthetic, no checkpoint).
    w1 = jax.random.normal(k_w1, (D, H), dtype=jnp.float32) * 0.1
    b1 = jax.random.normal(k_b1, (1, H), dtype=jnp.float32) * 0.01
    w2 = jax.random.normal(k_w2, (H, D), dtype=jnp.float32) * 0.1
    b2 = jax.random.normal(k_b2, (1, D), dtype=jnp.float32) * 0.01

    # Symmetric positive-definite Lyapunov matrix P.
    a = jax.random.normal(k_p, (D, D), dtype=jnp.float32)
    p = a @ a.T / D + jnp.eye(D, dtype=jnp.float32)

    # Small-batch check (single grid step).
    B = 8
    x = jax.random.normal(k_x, (B, D), dtype=jnp.float32)
    out = stable_policy(x, w1, b1, w2, b2, p)
    jax.block_until_ready(out)
    ref = reference(x, w1, b1, w2, b2, p)
    assert out.shape == (B, D)
    assert jnp.allclose(out, ref, atol=1e-4, rtol=1e-4), "mismatch vs reference (B=8)"

    # Multi-tile check: batch tiling with balanced tiles and a padded tail
    # (640 rows, block_b=256 -> 3 tiles of 216 rows, 8 padded rows).
    B2 = 640
    x2 = jax.random.normal(k_x2, (B2, D), dtype=jnp.float32)
    out2 = stable_policy(x2, w1, b1, w2, b2, p, block_b=256)
    jax.block_until_ready(out2)
    ref2 = reference(x2, w1, b1, w2, b2, p)
    assert out2.shape == (B2, D)
    assert jnp.allclose(out2, ref2, atol=1e-4, rtol=1e-4), "mismatch vs reference (B=640)"

    # Default-tile check: exercises the forced >=2-step grid (megacore path)
    # and a padded tail (520 rows -> 2 tiles of 264 rows, 8 padded rows).
    B3 = 520
    x3 = jax.random.normal(k_x3, (B3, D), dtype=jnp.float32)
    out3 = stable_policy(x3, w1, b1, w2, b2, p)
    jax.block_until_ready(out3)
    ref3 = reference(x3, w1, b1, w2, b2, p)
    assert out3.shape == (B3, D)
    assert jnp.allclose(out3, ref3, atol=1e-4, rtol=1e-4), "mismatch vs reference (B=520)"

    print("KERNEL_OK")
</pallas_src>

<mosaic_0001>
module attributes {stable_mosaic.version = 11 : i64} {
  func.func @stable_policy_kernel(%arg0: i32, %arg1: memref<8x16xf32, #tpu.memory_space<vmem>>, %arg2: memref<16x256xf32, #tpu.memory_space<vmem>>, %arg3: memref<1x128xf32, #tpu.memory_space<vmem>>, %arg4: memref<128x128xf32, #tpu.memory_space<vmem>>, %arg5: memref<1x128xf32, #tpu.memory_space<vmem>>, %arg6: memref<8x16xf32, #tpu.memory_space<vmem>>) attributes {dimension_semantics = [#tpu.dimension_semantics<parallel>], iteration_bounds = array<i64: 1>, scalar_prefetch = 0 : i64, scratch_operands = 0 : i64, tpu.core_type = #tpu.core_type<tc>, window_params = [{transform_indices = @transform_0, window_bounds = array<i64: 8, 16>}, {pipeline_mode = #tpu.pipeline_mode<synchronous>, transform_indices = @transform_1, window_bounds = array<i64: 16, 256>}, {pipeline_mode = #tpu.pipeline_mode<synchronous>, transform_indices = @transform_2, window_bounds = array<i64: 1, 128>}, {pipeline_mode = #tpu.pipeline_mode<synchronous>, transform_indices = @transform_3, window_bounds = array<i64: 128, 128>}, {pipeline_mode = #tpu.pipeline_mode<synchronous>, transform_indices = @transform_4, window_bounds = array<i64: 1, 128>}, {transform_indices = @transform_5, window_bounds = array<i64: 8, 16>}]} {
    %c0 = arith.constant 0 : index
    %c0_0 = arith.constant 0 : index
    %0 = vector.load %arg1[%c0, %c0_0] : memref<8x16xf32, #tpu.memory_space<vmem>>, vector<8x16xf32>
    %c0_1 = arith.constant 0 : index
    %c0_2 = arith.constant 0 : index
    %1 = vector.load %arg2[%c0_1, %c0_2] : memref<16x256xf32, #tpu.memory_space<vmem>>, vector<16x256xf32>
    %cst = arith.constant dense<0.000000e+00> : vector<8x256xf32>
    %2 = tpu.matmul %0, %1, %cst {dimension_numbers = #tpu.dot_dimension_numbers<[1], [0], [0], [1], [0, 0, 1, 1], [], []>} : vector<8x16xf32>, vector<16x256xf32>, vector<8x256xf32> -> vector<8x256xf32>
    %3 = vector.extract_strided_slice %2 {offsets = [0, 0], sizes = [8, 128], strides = [1, 1]} : vector<8x256xf32> to vector<8x128xf32>
    %4 = vector.extract_strided_slice %2 {offsets = [0, 128], sizes = [8, 128], strides = [1, 1]} : vector<8x256xf32> to vector<8x128xf32>
    %c0_3 = arith.constant 0 : index
    %c0_4 = arith.constant 0 : index
    %5 = vector.load %arg3[%c0_3, %c0_4] : memref<1x128xf32, #tpu.memory_space<vmem>>, vector<1x128xf32>
    %6 = vector.broadcast %5 : vector<1x128xf32> to vector<8x128xf32>
    %7 = arith.addf %3, %6 : vector<8x128xf32>
    %8 = math.tanh %7 : vector<8x128xf32>
    %c0_5 = arith.constant 0 : index
    %c0_6 = arith.constant 0 : index
    %9 = vector.load %arg4[%c0_5, %c0_6] : memref<128x128xf32, #tpu.memory_space<vmem>>, vector<128x128xf32>
    %cst_7 = arith.constant dense<0.000000e+00> : vector<8x128xf32>
    %10 = tpu.matmul %8, %9, %cst_7 {dimension_numbers = #tpu.dot_dimension_numbers<[1], [0], [0], [1], [0, 0, 1, 1], [], []>} : vector<8x128xf32>, vector<128x128xf32>, vector<8x128xf32> -> vector<8x128xf32>
    %c0_8 = arith.constant 0 : index
    %c0_9 = arith.constant 0 : index
    %11 = vector.load %arg5[%c0_8, %c0_9] : memref<1x128xf32, #tpu.memory_space<vmem>>, vector<1x128xf32>
    %12 = vector.broadcast %11 : vector<1x128xf32> to vector<8x128xf32>
    %13 = arith.addf %10, %12 : vector<8x128xf32>
    %14 = vector.extract_strided_slice %4 {offsets = [0, 0], sizes = [8, 16], strides = [1, 1]} : vector<8x128xf32> to vector<8x16xf32>
    %15 = arith.mulf %0, %14 : vector<8x16xf32>
    %cst_10 = arith.constant dense<0.000000e+00> : vector<8xf32>
    %16 = vector.multi_reduction <add>, %15, %cst_10 [1] : vector<8x16xf32> to vector<8xf32>
    %17 = vector.shape_cast %16 : vector<8xf32> to vector<8x1xf32>
    %18 = arith.mulf %4, %13 : vector<8x128xf32>
    %cst_11 = arith.constant dense<0.000000e+00> : vector<8xf32>
    %19 = vector.multi_reduction <add>, %18, %cst_11 [1] : vector<8x128xf32> to vector<8xf32>
    %20 = vector.shape_cast %19 : vector<8xf32> to vector<8x1xf32>
    %cst_12 = arith.constant 2.000000e+00 : f32
    %21 = vector.broadcast %cst_12 : f32 to vector<8x1xf32>
    %22 = arith.mulf %21, %20 : vector<8x1xf32>
    %23 = arith.mulf %4, %4 : vector<8x128xf32>
    %cst_13 = arith.constant dense<0.000000e+00> : vector<8xf32>
    %24 = vector.multi_reduction <add>, %23, %cst_13 [1] : vector<8x128xf32> to vector<8xf32>
    %25 = vector.shape_cast %24 : vector<8xf32> to vector<8x1xf32>
    %cst_14 = arith.constant 4.000000e+00 : f32
    %26 = vector.broadcast %cst_14 : f32 to vector<8x1xf32>
    %27 = arith.mulf %26, %25 : vector<8x1xf32>
    %cst_15 = arith.constant 1.000000e-01 : f32
    %28 = vector.broadcast %cst_15 : f32 to vector<8x1xf32>
    %29 = arith.mulf %28, %17 : vector<8x1xf32>
    %30 = arith.addf %22, %29 : vector<8x1xf32>
    %cst_16 = arith.constant 0.000000e+00 : f32
    %31 = vector.broadcast %cst_16 : f32 to vector<8x1xf32>
    %32 = arith.maximumf %30, %31 : vector<8x1xf32>
    %cst_17 = arith.constant 2.000000e+00 : f32
    %33 = vector.broadcast %cst_17 : f32 to vector<8x1xf32>
    %34 = arith.mulf %33, %32 : vector<8x1xf32>
    %cst_18 = arith.constant 9.99999997E-7 : f32
    %35 = vector.broadcast %cst_18 : f32 to vector<8x1xf32>
    %36 = arith.addf %27, %35 : vector<8x1xf32>
    %37 = arith.divf %34, %36 : vector<8x1xf32>
    %38 = vector.broadcast %37 : vector<8x1xf32> to vector<8x128xf32>
    %39 = arith.mulf %38, %4 : vector<8x128xf32>
    %40 = arith.subf %13, %39 : vector<8x128xf32>
    %41 = vector.extract_strided_slice %40 {offsets = [0, 0], sizes = [8, 16], strides = [1, 1]} : vector<8x128xf32> to vector<8x16xf32>
    %c0_19 = arith.constant 0 : index
    %c0_20 = arith.constant 0 : index
    %42 = vector.load %arg6[%c0_19, %c0_20] : memref<8x16xf32, #tpu.memory_space<vmem>>, vector<8x16xf32>
    tpu.vector_store %arg6[%c0_19, %c0_20], %41 {strides = array<i32>} : memref<8x16xf32, #tpu.memory_space<vmem>>, vector<8x16xf32>,
    return
  }
  func.func @transform_0(%arg0: i32) -> (i32, i32) {
    %c0_i32 = arith.constant 0 : i32
    %c0_i32_0 = arith.constant 0 : i32
    return %arg0, %c0_i32 : i32, i32
  }
  func.func @transform_1(%arg0: i32) -> (i32, i32) {
    %c0_i32 = arith.constant 0 : i32
    %c0_i32_0 = arith.constant 0 : i32
    %c0_i32_1 = arith.constant 0 : i32
    return %c0_i32, %c0_i32_0 : i32, i32
  }
  func.func @transform_2(%arg0: i32) -> (i32, i32) {
    %c0_i32 = arith.constant 0 : i32
    %c0_i32_0 = arith.constant 0 : i32
    %c0_i32_1 = arith.constant 0 : i32
    return %c0_i32, %c0_i32_0 : i32, i32
  }
  func.func @transform_3(%arg0: i32) -> (i32, i32) {
    %c0_i32 = arith.constant 0 : i32
    %c0_i32_0 = arith.constant 0 : i32
    %c0_i32_1 = arith.constant 0 : i32
    return %c0_i32, %c0_i32_0 : i32, i32
  }
  func.func @transform_4(%arg0: i32) -> (i32, i32) {
    %c0_i32 = arith.constant 0 : i32
    %c0_i32_0 = arith.constant 0 : i32
    %c0_i32_1 = arith.constant 0 : i32
    return %c0_i32, %c0_i32_0 : i32, i32
  }
  func.func @transform_5(%arg0: i32) -> (i32, i32) {
    %c0_i32 = arith.constant 0 : i32
    %c0_i32_0 = arith.constant 0 : i32
    return %arg0, %c0_i32 : i32, i32
  }
}

</mosaic_0001>

<bundles_post_ra>
// kernel: tpu_custom_call.1
= control target key start
LH: loop header
LB: loop body
LE: loop exit
PB: predicated region body
PF: predicated region fallthrough
CT: control target
= control target key end

     0   :  { %10 = vsyncpa [#allocation3], 0  ;;  %s570_s0 = inlined_call_operand.hbm [shape: f32[8,16], index: 0, kind: input, shape index: {}]   ;;  %s571_s1 = inlined_call_operand.hbm [shape: f32[16,256], index: 1, kind: input, shape index: {}]   ;;  %s572_s2 = inlined_call_operand.vmem [shape: f32[1,128], index: 2, kind: input, shape index: {}]   ;;  %s573_s3 = inlined_call_operand.hbm [shape: f32[128,128], index: 3, kind: input, shape index: {}]   ;;  %s574_s4 = inlined_call_operand.vmem [shape: f32[1,128], index: 4, kind: input, shape index: {}]   ;;  %s575_s5 = inlined_call_operand.hbm [shape: f32[8,16], index: 5, kind: output, shape index: {}]  }
   0x1   :  { %11 = vsyncpa [#allocation6], 0 }
   0x2   :  { %12 = vsyncpa [#allocation4], 0  ;;  %s472_s18 = smov [#allocation5]   ;;  %s378_s22 = scalar_lea.hbm %s571_s1, 512 }
   0x3   :  { %s28_s19 = sshll.u32 %s472_s18, 4  ;;  %p379_p0 = scmp.ne.s32.totalorder %s571_s1, %s378_s22  ;;  %s29_s19 = int_to_ptr.vmem [resolvable:$true] %s28_s19 }
   0x4   :  { %p382_p1 = scmp.lt.u32.totalorder %s378_s22, %s571_s1 }
   0x6   :  { %p384_p2 = pnand %p382_p1, %p379_p0 }
   0x8   :  { %387 = shalt.err (!%p384_p2)
}
   0x9   :  { %s388_s27 = scalar_lea.vmem %s29_s19, 512  ;;  %p393_p4 = scmp.lt.s32.totalorder %s29_s19, %s29_s19 }
   0xa   :  { %p389_p3 = scmp.ne.s32.totalorder %s29_s19, %s388_s27  ;;  %p394_p5 = scmp.lt.s32.totalorder %s388_s27, %s388_s27 }
   0xc   :  { %p395_p6 = por %p394_p5, %p393_p4 }
   0xe   :  { %p396_p7 = pnand %p395_p6, %p389_p3 }
  0x10   :  { %399 = shalt.err (!%p396_p7)
}
  0x11   :  { %s473_s28 = smov 256   ;;  %s474_s29 = smov 16  }
  0x12   :  { %34 = dma.hbm_to_vmem [thread:$0]  %s571_s1, 512, %s29_s19, [#allocation6], %s473_s28, %s473_s28, %s474_s29  }
  0x13   :  { %s475_s7 = smov [#allocation2]   ;;  %s476_s9 = smov [#allocation7]  }
  0x14   :  { %s19_s8 = sshll.u32 %s475_s7, 4  ;;  %s42_s10 = sshll.u32 %s476_s9, 4  ;;  %s20_s8 = int_to_ptr.vmem [resolvable:$true] %s19_s8  ;;  %s43_s10 = int_to_ptr.vmem [resolvable:$true] %s42_s10 }
  0x15   :  { %s400_s13 = scalar_lea.hbm %s570_s0, 128 }
  0x16   :  { %p401_p8 = scmp.ne.s32.totalorder %s570_s0, %s400_s13  ;;  %p404_p9 = scmp.lt.u32.totalorder %s400_s13, %s570_s0 }
  0x18   :  { %p406_p10 = pnand %p404_p9, %p401_p8 }
  0x1a   :  { %409 = shalt.err (!%p406_p10)
}
  0x1b   :  { %s410_s1 = scalar_lea.vmem %s20_s8, 128  ;;  %p415_p12 = scmp.lt.s32.totalorder %s20_s8, %s20_s8 }
  0x1c   :  { %p411_p11 = scmp.ne.s32.totalorder %s20_s8, %s410_s1  ;;  %p416_p13 = scmp.lt.s32.totalorder %s410_s1, %s410_s1 }
  0x1e   :  { %p417_p0 = por %p416_p13, %p415_p12 }
  0x20   :  { %p418_p1 = pnand %p417_p0, %p411_p11 }
  0x22   :  { %421 = shalt.err (!%p418_p1)
}
  0x23   :  { %22 = dma.hbm_to_vmem [thread:$0]  %s570_s0, 128, %s20_s8, [#allocation3]  }
  0x24   :  { %s422_s22 = scalar_lea.hbm %s573_s3, 2048 }
  0x25   :  { %p423_p2 = scmp.ne.s32.totalorder %s573_s3, %s422_s22  ;;  %p426_p3 = scmp.lt.u32.totalorder %s422_s22, %s573_s3 }
  0x27   :  { %p428_p4 = pnand %p426_p3, %p423_p2 }
  0x29   :  { %431 = shalt.err (!%p428_p4)
}
  0x2a   :  { %s432_s27 = scalar_lea.vmem %s43_s10, 2048  ;;  %p437_p6 = scmp.lt.s32.totalorder %s43_s10, %s43_s10 }
  0x2b   :  { %p433_p5 = scmp.ne.s32.totalorder %s43_s10, %s432_s27  ;;  %p438_p7 = scmp.lt.s32.totalorder %s432_s27, %s432_s27 }
  0x2d   :  { %p439_p8 = por %p438_p7, %p437_p6 }
  0x2f   :  { %p440_p9 = pnand %p439_p8, %p433_p5 }
  0x31   :  { %443 = shalt.err (!%p440_p9)
}
  0x32   :  { %s477_s0 = smov 128   ;;  %s478_s28 = smov 8  }
  0x33   :  { %48 = dma.hbm_to_vmem [thread:$0]  %s573_s3, 2048, %s43_s10, [#allocation6], %s477_s0, %s477_s0, %s478_s28  }
  0x34   :  { %466 = dma.done.wait [#allocation3], 128  }
  0x35   :  { %467 = vsyncadd [#allocation3], 4294967168 }
  0x36   :  { %468 = dma.done.wait [#allocation6], 2560  }
  0x37   :  { %469 = vsyncadd [#allocation6], 4294964736  ;;  %v479_v0 = vmov 0.0   ;;  %v480_v1 = vmov 0.0|0.0   ;;  %v62_v2 = vld [vmem:[#allocation5 + $0x8] sm:$0xff]  ;;  %v64_v3 = vld [vmem:[#allocation5 + $0x18] sm:$0xff] }
  0x38   :  { %133 = vmatprep.mubr.f32.mxu0 %v479_v0  ;;  %339 = vmatprep.subr.bf16.mxu1 %v480_v1  ;;  %v61_v4 = vld [vmem:[#allocation5] sm:$0xff]  ;;  %v335_v5 = vpack.c.bf16 %v64_v3, %v62_v2  ;;  %v63_v6 = vld [vmem:[#allocation5 + $0x10] sm:$0xff]  ;;  %v150_v9 = vld [vmem:[#allocation7 + $0x8] sm:$0xff]  ;;  %vm65_vm0 = vcmask 130048   ;;  %vm481_vm1 = vmmov 0  }
  0x39   :  { %v149_v7 = vld [vmem:[#allocation7] sm:$0xff]  ;;  %v337_v8 = vpack.c.bf16 %v63_v6, %v61_v4  ;;  %v151_v10 = vld [vmem:[#allocation7 + $0x10] sm:$0xff]  ;;  %v152_v11 = vld [vmem:[#allocation7 + $0x18] sm:$0xff]  ;;  %332 = vmatprep.mubr.msk.f32.mxu1 %vm481_vm1, %v479_v0 }
  0x3a   :  { %336 = vmatprep.subr.bf16.mxu0 %v335_v5  ;;  %v340_v12 = vpack.c.bf16 %v150_v9, %v149_v7  ;;  %v60_v13 = vld [vmem:[#allocation2] sm:$0xff]  ;;  %v343_v14 = vpack.c.bf16 %v152_v11, %v151_v10  ;;  %v153_v15 = vld [vmem:[#allocation7 + $0x20] sm:$0xff]  ;;  %v154_v16 = vld [vmem:[#allocation7 + $0x28] sm:$0xff] }
  0x3b   :  { %338 = vmatpush1.bf16.msra.mxu0 %v337_v8  ;;  %v346_v17 = vpack.c.bf16 %v154_v16, %v153_v15  ;;  %v155_v18 = vld [vmem:[#allocation7 + $0x30] sm:$0xff]  ;;  %v156_v19 = vld [vmem:[#allocation7 + $0x38] sm:$0xff]  ;;  %v157_v21 = vld [vmem:[#allocation7 + $0x40] sm:$0xff] }
  0x3c   :  { %341 = vmatpush3.bf16.msra.mxu1 %v340_v12  ;;  %v349_v20 = vpack.c.bf16 %v156_v19, %v155_v18  ;;  %v158_v22 = vld [vmem:[#allocation7 + $0x48] sm:$0xff]  ;;  %v159_v24 = vld [vmem:[#allocation7 + $0x50] sm:$0xff]  ;;  %v160_v25 = vld [vmem:[#allocation7 + $0x58] sm:$0xff] }
  0x3d   :  { %342 = vmatprep.subr.bf16.mxu1 %v480_v1  ;;  %v352_v23 = vpack.c.bf16 %v158_v22, %v157_v21  ;;  %v355_v26 = vpack.c.bf16 %v160_v25, %v159_v24  ;;  %v161_v27 = vld [vmem:[#allocation7 + $0x60] sm:$0xff]  ;;  %v162_v28 = vld [vmem:[#allocation7 + $0x68] sm:$0xff]  ;;  %v163_v30 = vld [vmem:[#allocation7 + $0x70] sm:$0xff] }
  0x3e   :  { %280 = vmatmul.mubr.msk.f32.vlgmr.msra.gmra.mrb[0].mxu0 %vm65_vm0, %v60_v13  ;;  %v358_v29 = vpack.c.bf16 %v162_v28, %v161_v27  ;;  %v164_v31 = vld [vmem:[#allocation7 + $0x78] sm:$0xff] }
  0x3f   :  { %v361_v32 = vpack.c.bf16 %v164_v31, %v163_v30  ;;  %v281_v33 = vld [vmem:[%s572_s2] ss:$0 sm:$0xff]  ;;  %s482_s2 = smov [#allocation8]  }
  0x40   :  { %344 = vmatpush3.bf16.msra.mxu1 %v343_v14  ;;  %v282_v41 = vld [vmem:[%s574_s4] ss:$0 sm:$0xff]  ;;  %s270_s4 = sshll.u32 %s482_s2, 4  ;;  %s271_s4 = int_to_ptr.vmem [resolvable:$true] %s270_s4 }
  0x41   :  { %345 = vmatprep.subr.bf16.mxu1 %v480_v1  ;;  %s444_s9 = scalar_lea.vmem %s271_s4, 128  ;;  %p449_p11 = scmp.lt.s32.totalorder %s271_s4, %s271_s4 }
  0x42   :  { %p445_p10 = scmp.ne.s32.totalorder %s271_s4, %s444_s9  ;;  %p450_p12 = scmp.lt.s32.totalorder %s444_s9, %s444_s9 }
  0x44   :  { %347 = vmatpush3.bf16.msra.mxu1 %v346_v17  ;;  %p451_p13 = por %p450_p12, %p449_p11 }
  0x45   :  { %348 = vmatprep.subr.bf16.mxu1 %v480_v1 }
  0x46   :  { %p452_p0 = pnand %p451_p13, %p445_p10 }
  0x48   :  { %350 = vmatpush3.bf16.msra.mxu1 %v349_v20 }
  0x49   :  { %351 = vmatprep.subr.bf16.mxu1 %v480_v1 }
  0x4c   :  { %353 = vmatpush3.bf16.msra.mxu1 %v352_v23 }
  0x4d   :  { %354 = vmatprep.subr.bf16.mxu1 %v480_v1 }
  0x50   :  { %356 = vmatpush3.bf16.msra.mxu1 %v355_v26 }
  0x51   :  { %357 = vmatprep.subr.bf16.mxu1 %v480_v1 }
  0x54   :  { %359 = vmatpush3.bf16.msra.mxu1 %v358_v29 }
  0x55   :  { %360 = vmatprep.subr.bf16.mxu1 %v480_v1 }
  0x58   :  { %362 = vmatpush3.bf16.msra.mxu1 %v361_v32 }
 0x111   :  { %v135_v34 = vpop.f32.mrb[0].mxu0 }
 0x112   :  { %v147_v35 = vadd.f32 %v281_v33, %v135_v34  ;;  %v137_v36 = vpop.f32.mrb[1].mxu0 }
 0x113   :  { %v250_v37 = vmul.f32 %v137_v36, %v137_v36  ;;  %v242_v38 = vmul.f32 %v137_v36, %v60_v13 }
 0x114   :  { %374 = vtanh.f32 %v147_v35 }
 0x115   :  { %251 = vadd.xlane.f32.xlu0 %v250_v37  ;;  %v243_v39 = vsel %vm65_vm0, %v242_v38, 0.0 }
 0x119   :  { %244 = vadd.xlane.f32.xlu0 %v243_v39 }
 0x11e   :  { %v375_v40 = vpop.eup %374 }
 0x11f   :  { %333 = vmatmul.mubr.f32.vlgmr.msra.gmra.mrb[0].mxu1 %v375_v40 }
 0x1a2   :  { %v252_v46 = vpop.xlane.xlu0 %251 }
 0x1a3   :  { %v253_v47 = vmul.f32 4.0, %v252_v46 }
 0x1a5   :  { %v258_v48 = vadd.f32 1e-06, %v253_v47 }
 0x1a6   :  { %v245_v49 = vpop.xlane.xlu0 %244 }
 0x1a7   :  { %376 = vrcp.f32 %v258_v48  ;;  %v254_v51 = vmul.f32 0.1, %v245_v49 }
 0x1b1   :  { %v377_v56 = vpop.eup %376 }
 0x1f2   :  { %v238_v42 = vpop.f32.mrb[0].mxu1 }
 0x1f3   :  { %v239_v43 = vadd.f32 %v282_v41, %v238_v42  ;;  %v334_v44 = vpop.f32.mrb[1].mxu1 }
 0x1f5   :  { %v246_v45 = vmul.f32 %v239_v43, %v137_v36 }
 0x1f7   :  { %247 = vadd.xlane.f32.xlu1 %v246_v45 }
 0x284   :  { %v248_v50 = vpop.xlane.xlu1 %247 }
 0x285   :  { %v249_v52 = vmul.f32 2.0, %v248_v50 }
 0x287   :  { %v255_v53 = vadd.f32 %v254_v51, %v249_v52 }
 0x289   :  { %v256_v54 = vmax.f32 %v255_v53, 0.0 }
 0x28b   :  { %v257_v55 = vmul.f32 2.0, %v256_v54 }
 0x28d   :  { %v260_v57 = vmul.f32 %v377_v56, %v257_v55 }
 0x28f   :  { %v261_v58 = vmul.f32 %v260_v57, %v137_v36 }
 0x291   :  { %v262_v59 = vsub.f32 %v239_v43, %v261_v58 }
 0x293   :  { %263 = vst.msk [vmem:[#allocation8] sm:$0xff] %vm65_vm0, %v262_v59 }
 0x294   :  { %455 = shalt.err (!%p452_p0)
}
 0x295   :  { %s456_s12 = scalar_lea.hbm %s575_s5, 128 }
 0x296   :  { %p457_p1 = scmp.ne.s32.totalorder %s575_s5, %s456_s12  ;;  %p460_p2 = scmp.lt.u32.totalorder %s456_s12, %s575_s5 }
 0x298   :  { %p462_p3 = pnand %p460_p2, %p457_p1 }
 0x29a   :  { %465 = shalt.err (!%p462_p3)
}
 0x29b   :  { %273 = dma.vmem_to_hbm [thread:$0]  %s271_s4, 128, %s575_s5, [#allocation4]  }
 0x29c   :  { %470 = dma.done.wait [#allocation4], 128  }
 0x29d   :  { %471 = vsyncadd [#allocation4], 4294967168 }
 0x29e   :  { %277 = vsyncpa [#allocation3], 1 }
 0x29f   :  { %278 = vsyncpa [#allocation6], 1 }
 0x2a0   :  { %279 = vsyncpa [#allocation4], 1 }

</bundles_post_ra>
